<compile_context>
chip_gen: v5e
topology: v5e:2x2
jax: 0.10.0
libtpu: 0.0.40
codegen_flags: <defaults>
</compile_context>

<pallas_src>
import functools

import jax
import jax.numpy as jnp
from jax import lax
from jax.experimental import pallas as pl
from jax.experimental.pallas import tpu as pltpu

_LANE = 128
_VMEM_LIMIT = 32 * 1024 * 1024   # explicit scoped-VMEM budget (v5e default is only 16 MiB)


def _fr_conv_kernel(x_ref, w_ref, y_ref, stats_ref):
    """ReLU + fused block-diagonal 1x1 conv + per-tile BN partial statistics.

    x_ref     : (2*C_in, TILE_S)  channels-first slab, lane axis = batch*spatial
    w_ref     : (C_out, 2*C_in)   block-diagonal [[W1, 0], [0, W2]]
    y_ref     : (C_out, TILE_S)   pre-BN conv output tile (blocked writeback)
    stats_ref : (1, C_out, 2)     per-tile per-channel (sum, sum_sq)
    """
    # ReLU commutes with the stride-2 subsampling done in the wrapper
    # (monotone, relu(0) == 0), so semantics match relu-before-pool.
    p = jnp.maximum(x_ref[...], 0.0)
    # Single MXU matmul produces both conv paths (block-diagonal weight),
    # f32 accumulation regardless of operand dtype.
    y = jnp.dot(w_ref[...], p, preferred_element_type=jnp.float32)   # (C_out, TILE_S)
    y_ref[...] = y
    # Per-channel partials while y is still in vregs (lane reduction -> XLU).
    s = jnp.sum(y, axis=1, keepdims=True)                            # (C_out, 1)
    ss = jnp.sum(y * y, axis=1, keepdims=True)                       # (C_out, 1)
    stats_ref[0] = jnp.concatenate([s, ss], axis=1)                  # (C_out, 2)


def _fr_bn_kernel(y_ref, scale_ref, shift_ref, out_ref):
    """Per-channel affine normalize: out = y * scale + shift (scale/shift: (C_out, 1))."""
    out_ref[...] = y_ref[...] * scale_ref[...] + shift_ref[...]


def factorized_reduction(x_nchw, w1, w2, gamma, beta, *, eps=1e-3,
                         compute_dtype=jnp.float32):
    """x_nchw: (N, C_in, H, W). w1, w2: (C_out//2, C_in) squeezed 1x1 conv weights.
    gamma, beta: (C_out,). Returns (N, C_out, ceil(H/2), ceil(W/2)) in NCHW.
    Pass compute_dtype=jnp.bfloat16 for production channel counts to halve
    HBM/VMEM traffic (accumulation stays f32)."""
    x = x_nchw.astype(jnp.float32)                       # stays NCHW -- no layout transpose of x
    n, c_in, h, w = x.shape
    h2 = -(-h // 2)
    w2_ = -(-w // 2)
    c_half = w1.shape[0]
    c_out = 2 * c_half
    c2 = 2 * c_in

    # path-1 sample: avgpool(k=1, s=2) == pure stride-2 subsample.
    x1 = x[:, :, ::2, ::2]                               # (N, C_in, h2, w2_)
    # path-2 sample: ZeroPad2d((0,1,0,1)) -> crop [1:,1:] -> stride-2 ==
    # odd-index subsample; only a single zero boundary row/col when H/W is odd.
    x2 = x[:, :, 1::2, 1::2]
    if h % 2 == 1:
        x2 = jnp.pad(x2, ((0, 0), (0, 0), (0, 1), (0, 0)))
    if w % 2 == 1:
        x2 = jnp.pad(x2, ((0, 0), (0, 0), (0, 0), (0, 1)))

    # Channels-first, lane-dense slab: (2*C_in, N*h2*w2_).  Batch is folded
    # into the lane axis.  (Quarter-sized layout plumbing only.)
    xin = jnp.concatenate([x1, x2], axis=1)              # (N, 2*C_in, h2, w2_)
    xin = jnp.transpose(xin, (1, 0, 2, 3)).reshape(c2, n * h2 * w2_)

    stot = n * h2 * w2_
    tile_s = min(512, -(-stot // _LANE) * _LANE)         # lane-dense tile (multiple of 128)
    stot_pad = -(-stot // tile_s) * tile_s
    num_tiles = stot_pad // tile_s
    if stot_pad != stot:
        # Zero columns: relu(0)=0 -> y=0 -> contribute nothing to sum/sum_sq.
        xin = jnp.pad(xin, ((0, 0), (0, stot_pad - stot)))

    # Fused block-diagonal weight [[W1, 0], [0, W2]] -> single matmul, and the
    # channel order of the output matches torch.cat([path1, path2], 1).
    wblk = jnp.zeros((c_out, c2), jnp.float32)
    wblk = wblk.at[:c_half, :c_in].set(w1.astype(jnp.float32))
    wblk = wblk.at[c_half:, c_in:].set(w2.astype(jnp.float32))

    xin = xin.astype(compute_dtype)
    wblk = wblk.astype(compute_dtype)

    # ---- Pass 1: ReLU + conv matmul + per-tile BN partials (fully pipelined,
    # "parallel" grid, no resident output). ----
    y_pad, stats = pl.pallas_call(
        _fr_conv_kernel,
        out_shape=(
            jax.ShapeDtypeStruct((c_out, stot_pad), jnp.float32),
            jax.ShapeDtypeStruct((num_tiles, c_out, 2), jnp.float32),
        ),
        grid_spec=pltpu.PrefetchScalarGridSpec(
            num_scalar_prefetch=0,
            grid=(num_tiles,),
            in_specs=[
                pl.BlockSpec((c2, tile_s), lambda i: (0, i)),
                pl.BlockSpec((c_out, c2), lambda i: (0, 0)),
            ],
            out_specs=(
                pl.BlockSpec((c_out, tile_s), lambda i: (0, i)),
                pl.BlockSpec((1, c_out, 2), lambda i: (i, 0, 0)),
            ),
        ),
        compiler_params=pltpu.CompilerParams(
            dimension_semantics=("parallel",),
            vmem_limit_bytes=_VMEM_LIMIT),
    )(xin, wblk)

    # ---- Tiny cross-tile reduction + BN scale/shift (XLA glue). ----
    count = float(stot)                                  # true N*H2*W2 (padding excluded)
    sum_c = jnp.sum(stats[:, :, 0], axis=0)              # (c_out,)
    sq_c = jnp.sum(stats[:, :, 1], axis=0)
    mean = sum_c / count
    # f32 accumulators keep E[x^2]-E[x]^2 cancellation well inside tolerance here.
    var = jnp.maximum(sq_c / count - mean * mean, 0.0)   # biased (training-mode) variance
    inv = lax.rsqrt(var + eps)
    g = gamma.astype(jnp.float32)
    b = beta.astype(jnp.float32)
    scale = g * inv
    shift = b - mean * scale
    scale = scale.reshape(c_out, 1)
    shift = shift.reshape(c_out, 1)

    # ---- Pass 2: normalize y in place (input_output_aliases), fully pipelined. ----
    out_pad = pl.pallas_call(
        _fr_bn_kernel,
        out_shape=jax.ShapeDtypeStruct((c_out, stot_pad), jnp.float32),
        grid_spec=pltpu.PrefetchScalarGridSpec(
            num_scalar_prefetch=0,
            grid=(num_tiles,),
            in_specs=[
                pl.BlockSpec((c_out, tile_s), lambda i: (0, i)),
                pl.BlockSpec((c_out, 1), lambda i: (0, 0)),
                pl.BlockSpec((c_out, 1), lambda i: (0, 0)),
            ],
            out_specs=pl.BlockSpec((c_out, tile_s), lambda i: (0, i)),
        ),
        compiler_params=pltpu.CompilerParams(
            dimension_semantics=("parallel",),
            vmem_limit_bytes=_VMEM_LIMIT),
        input_output_aliases={0: 0},
    )(y_pad, scale, shift)

    out = out_pad[:, :stot].reshape(c_out, n, h2, w2_)
    return jnp.transpose(out, (1, 0, 2, 3))              # back to NCHW


def _reference(x_nchw, w1, w2, gamma, beta, eps=1e-3):
    """Pure-JAX reference matching the PyTorch forward (training-mode BN)."""
    x = jnp.maximum(x_nchw.astype(jnp.float32), 0.0)
    p1 = x[:, :, ::2, ::2]
    xp = jnp.pad(x, ((0, 0), (0, 0), (0, 1), (0, 1)))
    p2 = xp[:, :, 1:, 1:][:, :, ::2, ::2]
    y1 = jnp.einsum('nchw,oc->nohw', p1, w1.astype(jnp.float32))
    y2 = jnp.einsum('nchw,oc->nohw', p2, w2.astype(jnp.float32))
    y = jnp.concatenate([y1, y2], axis=1)
    mean = jnp.mean(y, axis=(0, 2, 3), keepdims=True)
    var = jnp.mean((y - mean) ** 2, axis=(0, 2, 3), keepdims=True)
    yhat = (y - mean) / jnp.sqrt(var + eps)
    return yhat * gamma.reshape(1, -1, 1, 1) + beta.reshape(1, -1, 1, 1)


if __name__ == "__main__":
    # Small shapes consistent with the module: N=2, C_in=4, H=W=16, C_out=8.
    N, C_IN, H, W = 2, 4, 16, 16
    C_OUT = 8

    key = jax.random.PRNGKey(0)
    kx, kw1, kw2, kg, kb = jax.random.split(key, 5)
    x = jax.random.normal(kx, (N, C_IN, H, W), dtype=jnp.float32)
    # PyTorch Conv2d weight is (C_out//2, C_in, 1, 1); kept squeezed to (C_out//2, C_in).
    w1 = 0.1 * jax.random.normal(kw1, (C_OUT // 2, C_IN), dtype=jnp.float32)
    w2 = 0.1 * jax.random.normal(kw2, (C_OUT // 2, C_IN), dtype=jnp.float32)
    gamma = 1.0 + 0.1 * jax.random.normal(kg, (C_OUT,), dtype=jnp.float32)
    beta = 0.1 * jax.random.normal(kb, (C_OUT,), dtype=jnp.float32)

    fr = jax.jit(functools.partial(factorized_reduction, eps=1e-3))
    out = jax.block_until_ready(fr(x, w1, w2, gamma, beta))

    ref = _reference(x, w1, w2, gamma, beta, eps=1e-3)
    assert out.shape == (N, C_OUT, H // 2, W // 2), out.shape
    assert jnp.allclose(out, ref, rtol=1e-3, atol=1e-3), "mismatch vs reference"

    # TODO(synk): PyTorch training-mode BN also updates running_mean/running_var
    # buffers (a side effect); only the forward output is reproduced here.
    print("KERNEL_OK")
</pallas_src>

<mosaic_0001>
module attributes {stable_mosaic.version = 11 : i64} {
  func.func @_fr_conv_kernel(%arg0: i32, %arg1: memref<8x128xf32, #tpu.memory_space<vmem>>, %arg2: memref<8x8xf32, #tpu.memory_space<vmem>>, %arg3: memref<8x128xf32, #tpu.memory_space<vmem>>, %arg4: memref<1x8x2xf32, #tpu.memory_space<vmem>>) attributes {dimension_semantics = [#tpu.dimension_semantics<parallel>], iteration_bounds = array<i64: 1>, scalar_prefetch = 0 : i64, scratch_operands = 0 : i64, tpu.core_type = #tpu.core_type<tc>, window_params = [{transform_indices = @transform_0, window_bounds = array<i64: 8, 128>}, {pipeline_mode = #tpu.pipeline_mode<synchronous>, transform_indices = @transform_1, window_bounds = array<i64: 8, 8>}, {transform_indices = @transform_2, window_bounds = array<i64: 8, 128>}, {transform_indices = @transform_3, window_bounds = array<i64: 1, 8, 2>}]} {
    %c0 = arith.constant 0 : index
    %c0_0 = arith.constant 0 : index
    %0 = vector.load %arg1[%c0, %c0_0] : memref<8x128xf32, #tpu.memory_space<vmem>>, vector<8x128xf32>
    %cst = arith.constant 0.000000e+00 : f32
    %1 = vector.broadcast %cst : f32 to vector<8x128xf32>
    %2 = arith.maximumf %0, %1 : vector<8x128xf32>
    %c0_1 = arith.constant 0 : index
    %c0_2 = arith.constant 0 : index
    %3 = vector.load %arg2[%c0_1, %c0_2] : memref<8x8xf32, #tpu.memory_space<vmem>>, vector<8x8xf32>
    %cst_3 = arith.constant dense<0.000000e+00> : vector<8x128xf32>
    %4 = tpu.matmul %3, %2, %cst_3 {dimension_numbers = #tpu.dot_dimension_numbers<[1], [0], [0], [1], [0, 0, 1, 1], [], []>} : vector<8x8xf32>, vector<8x128xf32>, vector<8x128xf32> -> vector<8x128xf32>
    %c0_4 = arith.constant 0 : index
    %c0_5 = arith.constant 0 : index
    %5 = vector.load %arg3[%c0_4, %c0_5] : memref<8x128xf32, #tpu.memory_space<vmem>>, vector<8x128xf32>
    tpu.vector_store %arg3[%c0_4, %c0_5], %4 {strides = array<i32>} : memref<8x128xf32, #tpu.memory_space<vmem>>, vector<8x128xf32>,
    %cst_6 = arith.constant dense<0.000000e+00> : vector<8xf32>
    %6 = vector.multi_reduction <add>, %4, %cst_6 [1] : vector<8x128xf32> to vector<8xf32>
    %7 = vector.shape_cast %6 : vector<8xf32> to vector<8x1xf32>
    %8 = arith.mulf %4, %4 : vector<8x128xf32>
    %cst_7 = arith.constant dense<0.000000e+00> : vector<8xf32>
    %9 = vector.multi_reduction <add>, %8, %cst_7 [1] : vector<8x128xf32> to vector<8xf32>
    %10 = vector.shape_cast %9 : vector<8xf32> to vector<8x1xf32>
    %11 = tpu.concatenate %7, %10 in 1 : vector<8x1xf32>, vector<8x1xf32> -> vector<8x2xf32>
    %c0_8 = arith.constant 0 : index
    %c0_9 = arith.constant 0 : index
    %c0_10 = arith.constant 0 : index
    %12 = vector.load %arg4[%c0_8, %c0_9, %c0_10] : memref<1x8x2xf32, #tpu.memory_space<vmem>>, vector<1x8x2xf32>
    %13 = vector.shape_cast %12 : vector<1x8x2xf32> to vector<8x2xf32>
    %14 = vector.shape_cast %11 : vector<8x2xf32> to vector<1x8x2xf32>
    tpu.vector_store %arg4[%c0_8, %c0_9, %c0_10], %14 {strides = array<i32>} : memref<1x8x2xf32, #tpu.memory_space<vmem>>, vector<1x8x2xf32>,
    return
  }
  func.func @transform_0(%arg0: i32) -> (i32, i32) {
    %c0_i32 = arith.constant 0 : i32
    %c0_i32_0 = arith.constant 0 : i32
    return %c0_i32, %arg0 : i32, i32
  }
  func.func @transform_1(%arg0: i32) -> (i32, i32) {
    %c0_i32 = arith.constant 0 : i32
    %c0_i32_0 = arith.constant 0 : i32
    %c0_i32_1 = arith.constant 0 : i32
    return %c0_i32, %c0_i32_0 : i32, i32
  }
  func.func @transform_2(%arg0: i32) -> (i32, i32) {
    %c0_i32 = arith.constant 0 : i32
    %c0_i32_0 = arith.constant 0 : i32
    return %c0_i32, %arg0 : i32, i32
  }
  func.func @transform_3(%arg0: i32) -> (i32, i32, i32) {
    %c0_i32 = arith.constant 0 : i32
    %c0_i32_0 = arith.constant 0 : i32
    %c0_i32_1 = arith.constant 0 : i32
    return %arg0, %c0_i32, %c0_i32_0 : i32, i32, i32
  }
}

module attributes {stable_mosaic.version = 11 : i64} {
  func.func @_fr_bn_kernel(%arg0: i32, %arg1: memref<8x128xf32, #tpu.memory_space<vmem>>, %arg2: memref<8x1xf32, #tpu.memory_space<vmem>>, %arg3: memref<8x1xf32, #tpu.memory_space<vmem>>, %arg4: memref<8x128xf32, #tpu.memory_space<vmem>>) attributes {dimension_semantics = [#tpu.dimension_semantics<parallel>], iteration_bounds = array<i64: 1>, scalar_prefetch = 0 : i64, scratch_operands = 0 : i64, tpu.core_type = #tpu.core_type<tc>, window_params = [{transform_indices = @transform_0, window_bounds = array<i64: 8, 128>}, {pipeline_mode = #tpu.pipeline_mode<synchronous>, transform_indices = @transform_1, window_bounds = array<i64: 8, 1>}, {pipeline_mode = #tpu.pipeline_mode<synchronous>, transform_indices = @transform_2, window_bounds = array<i64: 8, 1>}, {transform_indices = @transform_3, window_bounds = array<i64: 8, 128>}]} {
    %c0 = arith.constant 0 : index
    %c0_0 = arith.constant 0 : index
    %0 = vector.load %arg1[%c0, %c0_0] : memref<8x128xf32, #tpu.memory_space<vmem>>, vector<8x128xf32>
    %c0_1 = arith.constant 0 : index
    %c0_2 = arith.constant 0 : index
    %1 = vector.load %arg2[%c0_1, %c0_2] : memref<8x1xf32, #tpu.memory_space<vmem>>, vector<8x1xf32>
    %2 = vector.broadcast %1 : vector<8x1xf32> to vector<8x128xf32>
    %3 = arith.mulf %0, %2 : vector<8x128xf32>
    %c0_3 = arith.constant 0 : index
    %c0_4 = arith.constant 0 : index
    %4 = vector.load %arg3[%c0_3, %c0_4] : memref<8x1xf32, #tpu.memory_space<vmem>>, vector<8x1xf32>
    %5 = vector.broadcast %4 : vector<8x1xf32> to vector<8x128xf32>
    %6 = arith.addf %3, %5 : vector<8x128xf32>
    %c0_5 = arith.constant 0 : index
    %c0_6 = arith.constant 0 : index
    %7 = vector.load %arg4[%c0_5, %c0_6] : memref<8x128xf32, #tpu.memory_space<vmem>>, vector<8x128xf32>
    tpu.vector_store %arg4[%c0_5, %c0_6], %6 {strides = array<i32>} : memref<8x128xf32, #tpu.memory_space<vmem>>, vector<8x128xf32>,
    return
  }
  func.func @transform_0(%arg0: i32) -> (i32, i32) {
    %c0_i32 = arith.constant 0 : i32
    %c0_i32_0 = arith.constant 0 : i32
    return %c0_i32, %arg0 : i32, i32
  }
  func.func @transform_1(%arg0: i32) -> (i32, i32) {
    %c0_i32 = arith.constant 0 : i32
    %c0_i32_0 = arith.constant 0 : i32
    %c0_i32_1 = arith.constant 0 : i32
    return %c0_i32, %c0_i32_0 : i32, i32
  }
  func.func @transform_2(%arg0: i32) -> (i32, i32) {
    %c0_i32 = arith.constant 0 : i32
    %c0_i32_0 = arith.constant 0 : i32
    %c0_i32_1 = arith.constant 0 : i32
    return %c0_i32, %c0_i32_0 : i32, i32
  }
  func.func @transform_3(%arg0: i32) -> (i32, i32) {
    %c0_i32 = arith.constant 0 : i32
    %c0_i32_0 = arith.constant 0 : i32
    return %c0_i32, %arg0 : i32, i32
  }
}

</mosaic_0001>

<bundles_post_ra>
// kernel: factorized_reduction.2
= control target key start
LH: loop header
LB: loop body
LE: loop exit
PB: predicated region body
PF: predicated region fallthrough
CT: control target
= control target key end

     0   :  { %vm16_vm0 = vcmask 64512   ;;  %vm46_vm1 = vcmask 7168   ;;  %vm48_vm2 = vcmask 15360   ;;  %s91_s0 = inlined_call_operand.vmem [shape: f32[8,128], index: 0, kind: input, shape index: {}]   ;;  %s92_s1 = inlined_call_operand.vmem [shape: f32[8,8], index: 1, kind: input, shape index: {}]   ;;  %s93_s2 = inlined_call_operand.vmem [shape: f32[8,128], index: 2, kind: output, shape index: {0}]   ;;  %s94_s3 = inlined_call_operand.vmem [shape: f32[1,8,2], index: 3, kind: output, shape index: {1}]  }
   0x1   :  { %v13_v0 = vld [vmem:[%s91_s0] sm:$0xff] }
   0x2   :  { %v14_v1 = vmax.f32 %v13_v0, 0.0  ;;  %v15_v2 = vld [vmem:[%s92_s1] sm:$0xff] }
   0x4   :  { %35 = vmatpush.msra.mxu0 %v14_v1 }
   0x5   :  { %58 = vmatmul.msk.f32.vlgmr.msra.gmra.mxu0 %vm16_vm0, %v15_v2 }
  0x82   :  { %v37_v3 = vpop.f32.mrf.mxu0 }
  0x83   :  { %40 = vst [vmem:[%s93_s2] sm:$0xff] %v37_v3  ;;  %41 = vadd.xlane.f32.xlu0 %v37_v3  ;;  %v43_v4 = vmul.f32 %v37_v3, %v37_v3 }
  0x8b   :  { %44 = vadd.xlane.f32.xlu0 %v43_v4 }
  0xf6   :  { %v42_v5 = vpop.xlane.xlu0 %41 }
  0xfe   :  { %v45_v6 = vpop.xlane.xlu0 %44 }
  0xff   :  { %v47_v7 = vsel %vm46_vm1, %v42_v5, %v45_v6 }
 0x100   :  { %49 = vst.msk [vmem:[%s94_s3] sm:$0xff] %vm48_vm2, %v47_v7 }

// kernel: factorized_reduction.3
= control target key start
LH: loop header
LB: loop body
LE: loop exit
PB: predicated region body
PF: predicated region fallthrough
CT: control target
= control target key end

     0   :  { %v36_v0 = vmov 0   ;;  %s69_s1 = inlined_call_operand.vmem [shape: f32[8,1], index: 1, kind: input, shape index: {}]   ;;  %s70_s2 = inlined_call_operand.vmem [shape: f32[8,1], index: 2, kind: input, shape index: {}]   ;;  %s71_s0 = inlined_call_operand.vmem [shape: f32[8,128], index: 0, kind: input, shape index: {}, may-alias: {0,3}]   ;;  %s72_s3 = inlined_call_operand.vmem [shape: f32[8,128], index: 3, kind: output, shape index: {}, may-alias: {0,3}]  }
   0x1   :  { %35 = vset.pattern.permute.xlu0 %v36_v0  ;;  %v15_v1 = vld [vmem:[%s69_s1] sm:$0xff] }
   0x2   :  { %18 = vperm.xlu0 %35, %v15_v1   ;;  %v22_v2 = vld [vmem:[%s70_s2] sm:$0xff] }
   0x3   :  { %v14_v4 = vld [vmem:[%s71_s0] sm:$0xff] }
   0xa   :  { %25 = vperm.xlu0 %35, %v22_v2  }
  0x74   :  { %v19_v3 = vpop.permute.xlu0 %18 }
  0x75   :  { %v21_v5 = vmul.f32 %v19_v3, %v14_v4 }
  0x7c   :  { %v26_v6 = vpop.permute.xlu0 %25 }
  0x7d   :  { %v28_v7 = vadd.f32 %v26_v6, %v21_v5 }
  0x7f   :  { %29 = vst [vmem:[%s72_s3] sm:$0xff] %v28_v7 }

</bundles_post_ra>
